<compile_context>
chip_gen: v5e
topology: v5e:2x2
jax: 0.10.0
libtpu: 0.0.40
codegen_flags: <defaults>
</compile_context>

<pallas_src>
import functools

import jax
import jax.numpy as jnp
from jax.experimental import pallas as pl
from jax.experimental.pallas import tpu as pltpu


def _conv1d_kernel(x_ref, w_ref, b_ref, o_ref, *, ksize, apply_relu):
    """Fused valid/stride-1 Conv1d (+ folded-BN bias) (+ optional ReLU).

    x_ref: (R, C_in, L)       R batch rows, NCL layout (length on lanes)
    w_ref: (C_out, K*C_in)    weight with BN scale folded in; column order
                              (k*C_in + ci) matches the im2col slab below
    b_ref: (C_out, 1)         per-output-channel bias
    o_ref: (R, C_out, L_out)  output rows, L_out = L - K + 1 (length on lanes)
    """
    n_rows = x_ref.shape[0]
    l_out = o_ref.shape[2]
    w = w_ref[...]
    b = b_ref[...]
    for r in range(n_rows):                       # static -> unrolled
        x = x_ref[r]                              # (C_in, L)
        # im2col slab: row (k*C_in + ci) holds x[ci, l + k]  -> (K*C_in, L_out)
        xcol = jnp.concatenate(
            [x[:, k:k + l_out] for k in range(ksize)], axis=0)
        y = jnp.dot(w, xcol, preferred_element_type=jnp.float32)  # (C_out, L_out)
        y = y + b
        if apply_relu:
            y = jnp.maximum(y, 0.0)
        o_ref[r] = y.astype(o_ref.dtype)


def _fused_conv1d(x_ncl, w2, bias, ksize, apply_relu):
    """x_ncl: (N, C_in, L); w2: (C_out, K*C_in); bias: (C_out,)."""
    N, C_in, L = x_ncl.shape
    C_out = w2.shape[0]
    L_out = L - ksize + 1

    # <= 2 grid steps: feeds both TensorCores on v7x ("parallel"), negligible
    # per-step overhead on single-TC v5e/v6e.  Leftover rows loop in-kernel.
    n_steps = 2 if (N >= 2 and N % 2 == 0) else 1
    rows = N // n_steps

    kernel = functools.partial(_conv1d_kernel, ksize=ksize,
                               apply_relu=apply_relu)
    return pl.pallas_call(
        kernel,
        out_shape=jax.ShapeDtypeStruct((N, C_out, L_out), jnp.float32),
        grid_spec=pltpu.PrefetchScalarGridSpec(
            num_scalar_prefetch=0,
            grid=(n_steps,),
            in_specs=[
                pl.BlockSpec((rows, C_in, L), lambda g: (g, 0, 0)),
                pl.BlockSpec((C_out, ksize * C_in), lambda g: (0, 0)),
                pl.BlockSpec((C_out, 1), lambda g: (0, 0)),
            ],
            out_specs=pl.BlockSpec((rows, C_out, L_out), lambda g: (g, 0, 0)),
        ),
        compiler_params=pltpu.CompilerParams(
            dimension_semantics=("parallel",)),
        # TODO(synk): for large L / wide channels, tile L with a (K-1) halo and
        # set vmem_limit_bytes for v7x's 64 MiB VMEM; unnecessary at these shapes.
    )(x_ncl.astype(jnp.float32), w2.astype(jnp.float32),
      bias.reshape(C_out, 1).astype(jnp.float32))


def conv1d_bn_relu(x_ncl, weight, gamma, beta, running_mean, running_var,
                   eps=1e-5):
    """Conv1DBNReLU forward (eval-mode BN). weight: (C_out, C_in, K) PyTorch layout."""
    C_out, C_in, K = weight.shape
    scale = gamma / jnp.sqrt(running_var + eps)                  # (C_out,)
    bias = beta - running_mean * scale                           # (C_out,)
    # Fold BN scale into the weights; reorder to (C_out, K*C_in) so column
    # (k*C_in + ci) matches the kernel's im2col row order.
    w2 = jnp.transpose(weight * scale[:, None, None], (0, 2, 1)).reshape(
        C_out, K * C_in)
    return _fused_conv1d(x_ncl, w2, bias, K, apply_relu=True)


def conv1d_plain(x_ncl, weight, bias):
    """Final nn.Conv1d (bias=True, no BN / ReLU)."""
    C_out, C_in, K = weight.shape
    w2 = jnp.transpose(weight, (0, 2, 1)).reshape(C_out, K * C_in)
    return _fused_conv1d(x_ncl, w2, bias, K, apply_relu=False)


def conv1d_block(x_ncl, bn_layers, w_last, b_last, eps=1e-5):
    """Conv1DBlock forward: Conv1DBNReLU stack + final Conv1d(bias=True)."""
    for (w, gamma, beta, mean, var) in bn_layers:
        x_ncl = conv1d_bn_relu(x_ncl, w, gamma, beta, mean, var, eps)
    return conv1d_plain(x_ncl, w_last, b_last)


if __name__ == "__main__":
    # Conv1DBlock(channels=[4, 8, 8, 6], ksize=3) on x of shape (2, 4, 16):
    #   Conv1DBNReLU(4->8), Conv1DBNReLU(8->8), Conv1d(8->6, bias=True)
    #   lengths: 16 -> 14 -> 12 -> 10
    channels = [4, 8, 8, 6]
    ksize = 3
    N, L = 2, 16

    keys = iter(jax.random.split(jax.random.PRNGKey(0), 64))
    x = jax.random.normal(next(keys), (N, channels[0], L), jnp.float32)

    bn_layers = []
    for i in range(len(channels) - 2):
        cin, cout = channels[i], channels[i + 1]
        bound = 1.0 / ((cin * ksize) ** 0.5)
        w = jax.random.uniform(next(keys), (cout, cin, ksize), jnp.float32,
                               minval=-bound, maxval=bound)
        gamma = 1.0 + 0.1 * jax.random.normal(next(keys), (cout,), jnp.float32)
        beta = 0.1 * jax.random.normal(next(keys), (cout,), jnp.float32)
        mean = 0.1 * jax.random.normal(next(keys), (cout,), jnp.float32)
        var = 1.0 + 0.1 * jax.random.uniform(next(keys), (cout,), jnp.float32)
        bn_layers.append((w, gamma, beta, mean, var))

    cin, cout = channels[-2], channels[-1]
    bound = 1.0 / ((cin * ksize) ** 0.5)
    w_last = jax.random.uniform(next(keys), (cout, cin, ksize), jnp.float32,
                                minval=-bound, maxval=bound)
    b_last = jax.random.uniform(next(keys), (cout,), jnp.float32,
                                minval=-bound, maxval=bound)

    out = conv1d_block(x, bn_layers, w_last, b_last)
    out = jax.block_until_ready(out)

    L_final = L - (len(channels) - 1) * (ksize - 1)
    assert out.shape == (N, channels[-1], L_final), out.shape

    # Pure-JAX reference of the same eval-mode forward pass.
    ref = x
    for (w, gamma, beta, mean, var) in bn_layers:
        ref = jax.lax.conv_general_dilated(
            ref, w, window_strides=(1,), padding="VALID",
            dimension_numbers=("NCH", "OIH", "NCH"))
        scale = gamma / jnp.sqrt(var + 1e-5)
        ref = ref * scale[None, :, None] + (beta - mean * scale)[None, :, None]
        ref = jnp.maximum(ref, 0.0)
    ref = jax.lax.conv_general_dilated(
        ref, w_last, window_strides=(1,), padding="VALID",
        dimension_numbers=("NCH", "OIH", "NCH"))
    ref = ref + b_last[None, :, None]

    assert bool(jnp.allclose(out, ref, atol=1e-5, rtol=1e-5)), (
        float(jnp.max(jnp.abs(out - ref))))

    print("KERNEL_OK")
</pallas_src>

<mosaic_0001>
module attributes {stable_mosaic.version = 11 : i64} {
  func.func @_conv1d_kernel(%arg0: i32, %arg1: memref<1x4x16xf32, #tpu.memory_space<vmem>>, %arg2: memref<8x12xf32, #tpu.memory_space<vmem>>, %arg3: memref<8x1xf32, #tpu.memory_space<vmem>>, %arg4: memref<1x8x14xf32, #tpu.memory_space<vmem>>) attributes {dimension_semantics = [#tpu.dimension_semantics<parallel>], iteration_bounds = array<i64: 2>, scalar_prefetch = 0 : i64, scratch_operands = 0 : i64, tpu.core_type = #tpu.core_type<tc>, window_params = [{transform_indices = @transform_0, window_bounds = array<i64: 1, 4, 16>}, {pipeline_mode = #tpu.pipeline_mode<synchronous>, transform_indices = @transform_1, window_bounds = array<i64: 8, 12>}, {pipeline_mode = #tpu.pipeline_mode<synchronous>, transform_indices = @transform_2, window_bounds = array<i64: 8, 1>}, {transform_indices = @transform_3, window_bounds = array<i64: 1, 8, 14>}]} {
    %c0 = arith.constant 0 : index
    %c0_0 = arith.constant 0 : index
    %0 = vector.load %arg2[%c0, %c0_0] : memref<8x12xf32, #tpu.memory_space<vmem>>, vector<8x12xf32>
    %c0_1 = arith.constant 0 : index
    %c0_2 = arith.constant 0 : index
    %1 = vector.load %arg3[%c0_1, %c0_2] : memref<8x1xf32, #tpu.memory_space<vmem>>, vector<8x1xf32>
    %c0_3 = arith.constant 0 : index
    %c0_4 = arith.constant 0 : index
    %c0_5 = arith.constant 0 : index
    %2 = vector.load %arg1[%c0_3, %c0_4, %c0_5] : memref<1x4x16xf32, #tpu.memory_space<vmem>>, vector<1x4x16xf32>
    %3 = vector.shape_cast %2 : vector<1x4x16xf32> to vector<4x16xf32>
    %4 = vector.extract_strided_slice %3 {offsets = [0, 0], sizes = [4, 14], strides = [1, 1]} : vector<4x16xf32> to vector<4x14xf32>
    %5 = vector.extract_strided_slice %3 {offsets = [0, 1], sizes = [4, 14], strides = [1, 1]} : vector<4x16xf32> to vector<4x14xf32>
    %6 = vector.extract_strided_slice %3 {offsets = [0, 2], sizes = [4, 14], strides = [1, 1]} : vector<4x16xf32> to vector<4x14xf32>
    %7 = tpu.concatenate %4, %5, %6 in 0 : vector<4x14xf32>, vector<4x14xf32>, vector<4x14xf32> -> vector<12x14xf32>
    %cst = arith.constant dense<0.000000e+00> : vector<8x14xf32>
    %8 = tpu.matmul %0, %7, %cst {dimension_numbers = #tpu.dot_dimension_numbers<[1], [0], [0], [1], [0, 0, 1, 1], [], []>} : vector<8x12xf32>, vector<12x14xf32>, vector<8x14xf32> -> vector<8x14xf32>
    %9 = vector.broadcast %1 : vector<8x1xf32> to vector<8x14xf32>
    %10 = arith.addf %8, %9 : vector<8x14xf32>
    %cst_6 = arith.constant 0.000000e+00 : f32
    %11 = vector.broadcast %cst_6 : f32 to vector<8x14xf32>
    %12 = arith.maximumf %10, %11 : vector<8x14xf32>
    %c0_7 = arith.constant 0 : index
    %c0_8 = arith.constant 0 : index
    %c0_9 = arith.constant 0 : index
    %13 = vector.load %arg4[%c0_7, %c0_8, %c0_9] : memref<1x8x14xf32, #tpu.memory_space<vmem>>, vector<1x8x14xf32>
    %14 = vector.shape_cast %13 : vector<1x8x14xf32> to vector<8x14xf32>
    %15 = vector.shape_cast %12 : vector<8x14xf32> to vector<1x8x14xf32>
    tpu.vector_store %arg4[%c0_7, %c0_8, %c0_9], %15 {strides = array<i32>} : memref<1x8x14xf32, #tpu.memory_space<vmem>>, vector<1x8x14xf32>,
    return
  }
  func.func @transform_0(%arg0: i32) -> (i32, i32, i32) {
    %c0_i32 = arith.constant 0 : i32
    %c0_i32_0 = arith.constant 0 : i32
    %c0_i32_1 = arith.constant 0 : i32
    return %arg0, %c0_i32, %c0_i32_0 : i32, i32, i32
  }
  func.func @transform_1(%arg0: i32) -> (i32, i32) {
    %c0_i32 = arith.constant 0 : i32
    %c0_i32_0 = arith.constant 0 : i32
    %c0_i32_1 = arith.constant 0 : i32
    return %c0_i32, %c0_i32_0 : i32, i32
  }
  func.func @transform_2(%arg0: i32) -> (i32, i32) {
    %c0_i32 = arith.constant 0 : i32
    %c0_i32_0 = arith.constant 0 : i32
    %c0_i32_1 = arith.constant 0 : i32
    return %c0_i32, %c0_i32_0 : i32, i32
  }
  func.func @transform_3(%arg0: i32) -> (i32, i32, i32) {
    %c0_i32 = arith.constant 0 : i32
    %c0_i32_0 = arith.constant 0 : i32
    %c0_i32_1 = arith.constant 0 : i32
    return %arg0, %c0_i32, %c0_i32_0 : i32, i32, i32
  }
}

</mosaic_0001>

<bundles_post_ra>
// kernel: tpu_custom_call.1
= control target key start
LH: loop header
LB: loop body
LE: loop exit
PB: predicated region body
PF: predicated region fallthrough
CT: control target
= control target key end

     0   :  { %8 = vsyncpa [#allocation3], 0  ;;  %s597_s0 = inlined_call_operand.vmem [shape: f32[2,4,16], index: 0, kind: input, shape index: {}]   ;;  %s598_s1 = inlined_call_operand.hbm [shape: f32[8,12], index: 1, kind: input, shape index: {}]   ;;  %s599_s2 = inlined_call_operand.vmem [shape: f32[8,1], index: 2, kind: input, shape index: {}]   ;;  %s600_s3 = inlined_call_operand.hbm [shape: f32[2,8,14], index: 3, kind: output, shape index: {}]  }
   0x1   :  { %9 = vsyncpa [#allocation4], 0 }
   0x2   :  { %11 = vsyncpa [#allocation4 + $0x1], 0  ;;  %s505_s12 = smov 0   ;;  %s507_s13 = smov 0  }
   0x3   :  { %s509_s14 = smov 0   ;;  %s511_s15 = smov 0  }
   0x4 LB: > { %s526_s16 = sadd.s32 4294967295, %s479_s15   ;;  %s314_s17 = sadd.s32 4294967294, %s479_s15   ;;  %s479_s15 = sphi %s511_s15, %s606_s15   ;;  %s475_s14 = sphi %s509_s14, %s605_s14   ;;  %s471_s13 = sphi %s507_s13, %s604_s13   ;;  %s467_s12 = sphi %s505_s12, %s603_s12  }
   0x5   : > { %s530_s18 = sadd.s32 1, %s479_s15   ;;  %s92_s19 = sadd.s32 1, %s475_s14 }
   0x6   : > { %s89_s20 = ssub.s32 %s479_s15, %s530_s18  ;;  %p102_p0 = scmp.ne.s32.totalorder %s475_s14, %s471_s13 }
   0x7   : > { %p90_p1 = scmp.eq.s32.totalorder %s89_s20, 0  ;;  %p103_p2 = scmp.eq.s32.totalorder %s526_s16, 1 }
   0x8   : > { %p108_p3 = scmp.ne.s32.totalorder %s471_s13, %s467_s12  ;;  %p109_p4 = scmp.eq.s32.totalorder %s314_s17, 1 }
   0x9   : > { %s541_s21 = scalar_select %p90_p1, %s475_s14, %s92_s19  }
   0xa   : > { %p543_p5 = por %p103_p2, %p102_p0  ;;  %p547_p6 = por %p109_p4, %p108_p3 }
   0xb   : > { %p315_p7 = scmp.ge.s32.totalorder %s479_s15, 1  ;;  %p116_p8 = scmp.lt.s32.totalorder %s479_s15, 3 }
   0xc   : > { %p342_p9 = scmp.eq.s32.totalorder %s526_s16, 0  ;;  %s128_s26 = sshll.u32 %s598_s1, 4  ;;  %s129_s26 = int_to_ptr.hbm [resolvable:$true] %s128_s26 }
   0xd   : > { %p117_p10 = pnand %p315_p7, %p116_p8  ;;  %s481_s27 = smov [#allocation2]  }
   0xe   : > { %s130_s28 = sshll.u32 %s481_s27, 4  ;;  %s131_s28 = int_to_ptr.vmem [resolvable:$true] %s130_s28 }
   0xf   : > { %p334_p11 = pneg %p117_p10  ;;  %153 = sbr.rel (%p117_p10) target bundleno = 286 (0x11e), region = 32 }
  0x11   : > { %p335_p12 = pnand %p342_p9, %p334_p11 }
  0x13   : > { %337 = dma.hbm_to_vmem [thread:$0]  (!%p335_p12), %s129_s26, 128, %s131_s28, [#allocation3]  }
  0x14   : > { %458 = dma.done.wait (%p342_p9), [#allocation3], 128  }
  0x15   : > { %460 = vsyncadd (%p342_p9), [#allocation3], 4294967168  ;;  %p177_p13 = scmp.lt.s32.totalorder %s526_s16, 1  ;;  %s482_s7 = smov 126   ;;  %v182_v2 = vld [vmem:[%s599_s2] sm:$0xff]  ;;  %v484_v3 = vmov 0  }
  0x16   : > { %s483_s8 = smov 127   ;;  %381 = vset.pattern.permute.xlu1 %v484_v3  ;;  %382 = vset.pattern.permute.xlu0 %v484_v3  ;;  %vm191_vm0 = vcmask 1043456   ;;  %v181_v6 = vld [vmem:[#allocation2] sm:$0xff]  ;;  %vm198_vm1 = vcmask 97280   ;;  %s174_s11 = sand.u32 1, %s471_s13   ;;  %vm225_vm2 = vcmask 113664  }
  0x17   : > { %s178_s29 = scalar_select %p177_p13, %s526_s16, 1  ;;  %195 = vperm.xlu1 %381, %v182_v2  }
  0x18   : > { %s320_s17 = sshll.u32 %s174_s11, 3  ;;  %s325_s19 = sshll.u32 %s526_s16, 3 }
  0x19   : > { %s321_s30 = sshll.u32 %s178_s29, 2  ;;  %s238_s25 = scalar_lea.hbm %s600_s3, %s325_s19 }
  0x1a   : > { %s180_s6 = scalar_lea.vmem %s597_s0, %s321_s30  ;;  %s176_s26 = scalar_lea.vmem [#allocation5], %s320_s17 }
  0x1b   : > { %v183_v0 = vld [vmem:[%s180_s6] sm:$0xf]  ;;  %s240_s27 = sshll.u32 %s176_s26, 4  ;;  %s242_s28 = sshll.u32 %s238_s25, 4  ;;  %s241_s27 = int_to_ptr.vmem [resolvable:$true] %s240_s27  ;;  %s243_s28 = int_to_ptr.hbm [resolvable:$true] %s242_s28 }
  0x1c   : > { %189 = vrot.lane.b32.xlu0 %v183_v0, %s482_s7  ;;  %v185_v1 = vrot.slane %v183_v0, 4  ;;  %s228_s29 = scalar_lea.sflag [#allocation4], %s174_s11  ;;  %s427_s30 = sshra.s32 %s243_s28, 4  ;;  %s428_s30 = int_to_ptr.hbm [resolvable:$true] %s427_s30 }
  0x1d   : > { %s429_s16 = scalar_lea.hbm %s428_s30, 8  ;;  %s433_s6 = scalar_lea.hbm %s600_s3, 16 }
  0x1e   : > { %p430_p0 = scmp.ne.s32.totalorder %s428_s30, %s429_s16  ;;  %p434_p3 = scmp.lt.s32.totalorder %s428_s30, %s600_s3 }
  0x1f   : > { %p435_p4 = scmp.lt.s32.totalorder %s433_s6, %s429_s16 }
  0x20   : > { %p431_p1 = pnand %p430_p0, %p543_p5 }
  0x21   : > { %p436_p7 = por %p435_p4, %p434_p3 }
  0x22   : > { %p432_p2 = pneg %p431_p1 }
  0x24   : > { %186 = vrot.lane.b32.xlu0 %v185_v1, %s483_s8  ;;  %p437_p8 = pnand %p436_p7, %p432_p2 }
  0x89   : > { %v196_v8 = vpop.permute.xlu1 %195 }
  0x8e   : > { %v190_v4 = vpop.permute.xlu0 %189 }
  0x8f   : > { %322 = vmatpush.msk.msra.mxu0 %vm191_vm0, %v190_v4 }
  0x96   : > { %v187_v5 = vpop.permute.xlu0 %186 }
  0x97   : > { %v192_v7 = vsel %vm191_vm0, %v183_v0, %v187_v5 }
  0x98   : > { %219 = vmatpush.msra.mxu0 %v192_v7 }
  0x99   : > { %323 = vmatmul.msk.f32.vlgmr.msra.gmra.mxu0 %vm198_vm1, %v181_v6 }
 0x116   : > { %v221_v9 = vpop.f32.mrf.mxu0 }
 0x117   : > { %v222_v10 = vadd.f32 %v221_v9, %v196_v8 }
 0x119   : > { %v224_v11 = vmax.f32 %v222_v10, 0.0 }
 0x11b   : > { %226 = vst.msk [vmem:[%s176_s26] sm:$0xff] %vm225_vm2, %v224_v11 }
 0x11c   : > { %440 = shalt.err (!%p437_p8)
}
 0x11d   : > { %332 = dma.vmem_to_hbm [thread:$0]  (%p543_p5), %s241_s27, 128, %s243_s28, %s228_s29  }
 0x11e PF: > { %p344_p9 = scmp.ge.s32.totalorder %s479_s15, 2  ;;  %s254_s9 = sand.u32 1, %s467_s12  }
 0x11f   : > { %s255_s10 = scalar_lea.sflag [#allocation4], %s254_s9 }
 0x120   : > { %p339_p10 = pnand %p344_p9, %p547_p6 }
 0x122   : > { %p340_p11 = pneg %p339_p10 }
 0x124   : > { %462 = dma.done.wait (%p340_p11), %s255_s10, 128  }
 0x125   : > { %464 = vsyncadd (%p340_p11), %s255_s10, 4294967168  ;;  %p14_p12 = scmp.ge.s32.totalorder %s530_s18, 4   ;;  %s603_s12 = smov %s471_s13 }
 0x126   : > { %s604_s13 = smov %s475_s14  ;;  %s605_s14 = smov %s541_s21 }
 0x127   : > { %s606_s15 = smov %s530_s18  ;;  %16 = sbr.rel (!%p14_p12) target bundleno = 4 (0x4), region = 72 }
 0x12c   :  { %261 = vsyncpa [#allocation3], 1 }
 0x12d   :  { %263 = vsyncpa [#allocation3 + $0x1], 1 }
 0x12e   :  { %264 = vsyncpa [#allocation4], 1 }
 0x12f   :  { %266 = vsyncpa [#allocation4 + $0x1], 1 }

</bundles_post_ra>
